<compile_context>
chip_gen: v5e
topology: v5e:2x2
jax: 0.10.0
libtpu: 0.0.40
codegen_flags: <defaults>
</compile_context>

<pallas_src>
import jax
import jax.numpy as jnp
from jax.experimental import pallas as pl
from jax.experimental.pallas import tpu as pltpu

RNN_HIDDEN = 128
NUM_CLASSES = 10
PADDED_OUT = 128           # lane-dense padded class dimension
NEG_BIG = -1e30            # bias for padded (fake) classes -> exp underflows to 0


def _vuln_kernel(x_ref, w0_ref, b0_ref, w1_ref, b1_ref, wf_ref, bf_ref, o_ref):
    x = x_ref[...]                                                      # [T, H_in]

    # ---- Bidirectional RNN layer 0 (seq_len == 1, h_{-1} == 0: W_hh term is 0,
    # ---- b_hh folded into the bias; fwd/bwd weights fused -> one 256-wide dot).
    z = jnp.tanh(jnp.dot(x, w0_ref[...],
                         preferred_element_type=jnp.float32) + b0_ref[...])   # [T, 256]

    # ---- Bidirectional RNN layer 1 (same reduction, fused directions).
    o = jnp.tanh(jnp.dot(z, w1_ref[...],
                         preferred_element_type=jnp.float32) + b1_ref[...])   # [T, 256]

    # ---- AvgPool(1,2) + Linear(128,10) folded into one [256, 128] matmul
    # (columns >= 10 are zero-weight with a -1e30 bias so they vanish in softmax).
    res = jnp.dot(o, wf_ref[...],
                  preferred_element_type=jnp.float32) + bf_ref[...]           # [T, 128]

    # ---- Numerically-stable softmax (padded columns contribute exactly 0).
    m = jnp.max(res, axis=-1, keepdims=True)
    e = jnp.exp(res - m)
    inv = pl.reciprocal(jnp.sum(e, axis=-1, keepdims=True), approx=False)
    o_ref[...] = e * inv


def _prepare_params(raw):
    """Fuse per-direction RNN weights and fold the AvgPool into the out Linear."""
    w0 = jnp.concatenate([raw["w0f"], raw["w0b"]], axis=1)        # [H_in, 256]
    b0 = jnp.concatenate([raw["b0f"], raw["b0b"]], axis=1)        # [1, 256]
    w1 = jnp.concatenate([raw["w1f"], raw["w1b"]], axis=1)        # [256, 256]
    b1 = jnp.concatenate([raw["b1f"], raw["b1b"]], axis=1)        # [1, 256]
    # pooled @ wout == o @ (0.5 * repeat(wout, 2, axis=0))        -> [256, 10]
    w_fold = 0.5 * jnp.repeat(raw["wout"], 2, axis=0)
    w_fold = jnp.pad(w_fold, ((0, 0), (0, PADDED_OUT - NUM_CLASSES)))       # [256, 128]
    b_fold = jnp.concatenate(
        [raw["bout"], jnp.full((1, PADDED_OUT - NUM_CLASSES), NEG_BIG, jnp.float32)],
        axis=1)                                                              # [1, 128]
    return {"w0": w0, "b0": b0, "w1": w1, "b1": b1, "w_fold": w_fold, "b_fold": b_fold}


def vulnerability_detection_forward(x, fused, *, tile_n=1024):
    """x: [N, H_in] float32 -> class probabilities [N, 10] float32."""
    n, h_in = x.shape
    tile_n = min(tile_n, n)                       # small batches: one full-array tile
    grid = (pl.cdiv(n, tile_n),)

    out_padded = pl.pallas_call(
        _vuln_kernel,
        out_shape=jax.ShapeDtypeStruct((n, PADDED_OUT), jnp.float32),
        grid_spec=pltpu.PrefetchScalarGridSpec(
            num_scalar_prefetch=0,
            grid=grid,
            in_specs=[
                pl.BlockSpec((tile_n, h_in), lambda i: (i, 0)),                 # x tile
                pl.BlockSpec((h_in, 2 * RNN_HIDDEN), lambda i: (0, 0)),         # w0
                pl.BlockSpec((1, 2 * RNN_HIDDEN), lambda i: (0, 0)),            # b0
                pl.BlockSpec((2 * RNN_HIDDEN, 2 * RNN_HIDDEN), lambda i: (0, 0)),  # w1
                pl.BlockSpec((1, 2 * RNN_HIDDEN), lambda i: (0, 0)),            # b1
                pl.BlockSpec((2 * RNN_HIDDEN, PADDED_OUT), lambda i: (0, 0)),   # w_fold
                pl.BlockSpec((1, PADDED_OUT), lambda i: (0, 0)),                # b_fold
            ],
            out_specs=pl.BlockSpec((tile_n, PADDED_OUT), lambda i: (i, 0)),
        ),
        compiler_params=pltpu.CompilerParams(dimension_semantics=("parallel",)),
    )(x, fused["w0"], fused["b0"], fused["w1"], fused["b1"],
      fused["w_fold"], fused["b_fold"])

    return out_padded[:, :NUM_CLASSES]


def _ref_forward(x, raw):
    """Pure-JAX reference mirroring the PyTorch forward (unfused params)."""
    h0f = jnp.tanh(x @ raw["w0f"] + raw["b0f"])
    h0b = jnp.tanh(x @ raw["w0b"] + raw["b0b"])
    z = jnp.concatenate([h0f, h0b], axis=-1)
    h1f = jnp.tanh(z @ raw["w1f"] + raw["b1f"])
    h1b = jnp.tanh(z @ raw["w1b"] + raw["b1b"])
    o = jnp.concatenate([h1f, h1b], axis=-1)
    pooled = 0.5 * o[:, 0::2] + 0.5 * o[:, 1::2]
    res = pooled @ raw["wout"] + raw["bout"]
    return jax.nn.softmax(res, axis=-1)


def _init_params(key, h_in):
    """Deterministic init mimicking PyTorch RNN/Linear U(-1/sqrt(fan), +)."""
    keys = jax.random.split(key, 14)
    k_rnn = 1.0 / (RNN_HIDDEN ** 0.5)
    k_lin = 1.0 / (RNN_HIDDEN ** 0.5)

    def u(kk, shape, bound):
        return jax.random.uniform(kk, shape, jnp.float32, -bound, bound)

    # Weights stored pre-transposed as [in, out]; bias = b_ih + b_hh (the
    # recurrent term is identically zero for seq_len == 1 with zero init state).
    return {
        "w0f": u(keys[0], (h_in, RNN_HIDDEN), k_rnn),
        "w0b": u(keys[1], (h_in, RNN_HIDDEN), k_rnn),
        "b0f": u(keys[2], (1, RNN_HIDDEN), k_rnn) + u(keys[3], (1, RNN_HIDDEN), k_rnn),
        "b0b": u(keys[4], (1, RNN_HIDDEN), k_rnn) + u(keys[5], (1, RNN_HIDDEN), k_rnn),
        "w1f": u(keys[6], (2 * RNN_HIDDEN, RNN_HIDDEN), k_rnn),
        "w1b": u(keys[7], (2 * RNN_HIDDEN, RNN_HIDDEN), k_rnn),
        "b1f": u(keys[8], (1, RNN_HIDDEN), k_rnn) + u(keys[9], (1, RNN_HIDDEN), k_rnn),
        "b1b": u(keys[10], (1, RNN_HIDDEN), k_rnn) + u(keys[11], (1, RNN_HIDDEN), k_rnn),
        "wout": u(keys[12], (RNN_HIDDEN, NUM_CLASSES), k_lin),
        "bout": u(keys[13], (1, NUM_CLASSES), k_lin),
    }


if __name__ == "__main__":
    N, H_IN = 8, 32  # small node-batch, hidden=32 feature dim
    key = jax.random.PRNGKey(0)
    kx, kp = jax.random.split(key)
    x = jax.random.normal(kx, (N, H_IN), jnp.float32)
    raw_params = _init_params(kp, H_IN)
    fused_params = _prepare_params(raw_params)

    out = jax.block_until_ready(vulnerability_detection_forward(x, fused_params))
    ref = _ref_forward(x, raw_params)

    assert out.shape == (N, NUM_CLASSES)
    assert jnp.allclose(jnp.sum(out, axis=-1), 1.0, atol=1e-5)
    assert jnp.allclose(out, ref, atol=1e-5, rtol=1e-5)
    print("KERNEL_OK")
</pallas_src>

<mosaic_0001>
module attributes {stable_mosaic.version = 11 : i64} {
  func.func @_vuln_kernel(%arg0: i32, %arg1: memref<8x32xf32, #tpu.memory_space<vmem>>, %arg2: memref<32x256xf32, #tpu.memory_space<vmem>>, %arg3: memref<1x256xf32, #tpu.memory_space<vmem>>, %arg4: memref<256x256xf32, #tpu.memory_space<vmem>>, %arg5: memref<1x256xf32, #tpu.memory_space<vmem>>, %arg6: memref<256x128xf32, #tpu.memory_space<vmem>>, %arg7: memref<1x128xf32, #tpu.memory_space<vmem>>, %arg8: memref<8x128xf32, #tpu.memory_space<vmem>>) attributes {dimension_semantics = [#tpu.dimension_semantics<parallel>], iteration_bounds = array<i64: 1>, scalar_prefetch = 0 : i64, scratch_operands = 0 : i64, tpu.core_type = #tpu.core_type<tc>, window_params = [{transform_indices = @transform_0, window_bounds = array<i64: 8, 32>}, {pipeline_mode = #tpu.pipeline_mode<synchronous>, transform_indices = @transform_1, window_bounds = array<i64: 32, 256>}, {pipeline_mode = #tpu.pipeline_mode<synchronous>, transform_indices = @transform_2, window_bounds = array<i64: 1, 256>}, {pipeline_mode = #tpu.pipeline_mode<synchronous>, transform_indices = @transform_3, window_bounds = array<i64: 256, 256>}, {pipeline_mode = #tpu.pipeline_mode<synchronous>, transform_indices = @transform_4, window_bounds = array<i64: 1, 256>}, {pipeline_mode = #tpu.pipeline_mode<synchronous>, transform_indices = @transform_5, window_bounds = array<i64: 256, 128>}, {pipeline_mode = #tpu.pipeline_mode<synchronous>, transform_indices = @transform_6, window_bounds = array<i64: 1, 128>}, {transform_indices = @transform_7, window_bounds = array<i64: 8, 128>}]} {
    %c0 = arith.constant 0 : index
    %c0_0 = arith.constant 0 : index
    %0 = vector.load %arg1[%c0, %c0_0] : memref<8x32xf32, #tpu.memory_space<vmem>>, vector<8x32xf32>
    %c0_1 = arith.constant 0 : index
    %c0_2 = arith.constant 0 : index
    %1 = vector.load %arg2[%c0_1, %c0_2] : memref<32x256xf32, #tpu.memory_space<vmem>>, vector<32x256xf32>
    %cst = arith.constant dense<0.000000e+00> : vector<8x256xf32>
    %2 = tpu.matmul %0, %1, %cst {dimension_numbers = #tpu.dot_dimension_numbers<[1], [0], [0], [1], [0, 0, 1, 1], [], []>} : vector<8x32xf32>, vector<32x256xf32>, vector<8x256xf32> -> vector<8x256xf32>
    %c0_3 = arith.constant 0 : index
    %c0_4 = arith.constant 0 : index
    %3 = vector.load %arg3[%c0_3, %c0_4] : memref<1x256xf32, #tpu.memory_space<vmem>>, vector<1x256xf32>
    %4 = vector.broadcast %3 : vector<1x256xf32> to vector<8x256xf32>
    %5 = arith.addf %2, %4 : vector<8x256xf32>
    %6 = math.tanh %5 : vector<8x256xf32>
    %c0_5 = arith.constant 0 : index
    %c0_6 = arith.constant 0 : index
    %7 = vector.load %arg4[%c0_5, %c0_6] : memref<256x256xf32, #tpu.memory_space<vmem>>, vector<256x256xf32>
    %cst_7 = arith.constant dense<0.000000e+00> : vector<8x256xf32>
    %8 = tpu.matmul %6, %7, %cst_7 {dimension_numbers = #tpu.dot_dimension_numbers<[1], [0], [0], [1], [0, 0, 1, 1], [], []>} : vector<8x256xf32>, vector<256x256xf32>, vector<8x256xf32> -> vector<8x256xf32>
    %c0_8 = arith.constant 0 : index
    %c0_9 = arith.constant 0 : index
    %9 = vector.load %arg5[%c0_8, %c0_9] : memref<1x256xf32, #tpu.memory_space<vmem>>, vector<1x256xf32>
    %10 = vector.broadcast %9 : vector<1x256xf32> to vector<8x256xf32>
    %11 = arith.addf %8, %10 : vector<8x256xf32>
    %12 = math.tanh %11 : vector<8x256xf32>
    %c0_10 = arith.constant 0 : index
    %c0_11 = arith.constant 0 : index
    %13 = vector.load %arg6[%c0_10, %c0_11] : memref<256x128xf32, #tpu.memory_space<vmem>>, vector<256x128xf32>
    %cst_12 = arith.constant dense<0.000000e+00> : vector<8x128xf32>
    %14 = tpu.matmul %12, %13, %cst_12 {dimension_numbers = #tpu.dot_dimension_numbers<[1], [0], [0], [1], [0, 0, 1, 1], [], []>} : vector<8x256xf32>, vector<256x128xf32>, vector<8x128xf32> -> vector<8x128xf32>
    %c0_13 = arith.constant 0 : index
    %c0_14 = arith.constant 0 : index
    %15 = vector.load %arg7[%c0_13, %c0_14] : memref<1x128xf32, #tpu.memory_space<vmem>>, vector<1x128xf32>
    %16 = vector.broadcast %15 : vector<1x128xf32> to vector<8x128xf32>
    %17 = arith.addf %14, %16 : vector<8x128xf32>
    %cst_15 = arith.constant dense<0xFF800000> : vector<8xf32>
    %18 = vector.multi_reduction <maximumf>, %17, %cst_15 [1] : vector<8x128xf32> to vector<8xf32>
    %19 = vector.shape_cast %18 : vector<8xf32> to vector<8x1xf32>
    %20 = vector.broadcast %19 : vector<8x1xf32> to vector<8x128xf32>
    %21 = arith.subf %17, %20 : vector<8x128xf32>
    %22 = math.exp %21 : vector<8x128xf32>
    %cst_16 = arith.constant dense<0.000000e+00> : vector<8xf32>
    %23 = vector.multi_reduction <add>, %22, %cst_16 [1] : vector<8x128xf32> to vector<8xf32>
    %24 = vector.shape_cast %23 : vector<8xf32> to vector<8x1xf32>
    %25 = tpu.reciprocal %24 : vector<8x1xf32> -> vector<8x1xf32>
    %26 = vector.broadcast %25 : vector<8x1xf32> to vector<8x128xf32>
    %27 = arith.mulf %22, %26 : vector<8x128xf32>
    %c0_17 = arith.constant 0 : index
    %c0_18 = arith.constant 0 : index
    %28 = vector.load %arg8[%c0_17, %c0_18] : memref<8x128xf32, #tpu.memory_space<vmem>>, vector<8x128xf32>
    tpu.vector_store %arg8[%c0_17, %c0_18], %27 {strides = array<i32>} : memref<8x128xf32, #tpu.memory_space<vmem>>, vector<8x128xf32>,
    return
  }
  func.func @transform_0(%arg0: i32) -> (i32, i32) {
    %c0_i32 = arith.constant 0 : i32
    %c0_i32_0 = arith.constant 0 : i32
    return %arg0, %c0_i32 : i32, i32
  }
  func.func @transform_1(%arg0: i32) -> (i32, i32) {
    %c0_i32 = arith.constant 0 : i32
    %c0_i32_0 = arith.constant 0 : i32
    %c0_i32_1 = arith.constant 0 : i32
    return %c0_i32, %c0_i32_0 : i32, i32
  }
  func.func @transform_2(%arg0: i32) -> (i32, i32) {
    %c0_i32 = arith.constant 0 : i32
    %c0_i32_0 = arith.constant 0 : i32
    %c0_i32_1 = arith.constant 0 : i32
    return %c0_i32, %c0_i32_0 : i32, i32
  }
  func.func @transform_3(%arg0: i32) -> (i32, i32) {
    %c0_i32 = arith.constant 0 : i32
    %c0_i32_0 = arith.constant 0 : i32
    %c0_i32_1 = arith.constant 0 : i32
    return %c0_i32, %c0_i32_0 : i32, i32
  }
  func.func @transform_4(%arg0: i32) -> (i32, i32) {
    %c0_i32 = arith.constant 0 : i32
    %c0_i32_0 = arith.constant 0 : i32
    %c0_i32_1 = arith.constant 0 : i32
    return %c0_i32, %c0_i32_0 : i32, i32
  }
  func.func @transform_5(%arg0: i32) -> (i32, i32) {
    %c0_i32 = arith.constant 0 : i32
    %c0_i32_0 = arith.constant 0 : i32
    %c0_i32_1 = arith.constant 0 : i32
    return %c0_i32, %c0_i32_0 : i32, i32
  }
  func.func @transform_6(%arg0: i32) -> (i32, i32) {
    %c0_i32 = arith.constant 0 : i32
    %c0_i32_0 = arith.constant 0 : i32
    %c0_i32_1 = arith.constant 0 : i32
    return %c0_i32, %c0_i32_0 : i32, i32
  }
  func.func @transform_7(%arg0: i32) -> (i32, i32) {
    %c0_i32 = arith.constant 0 : i32
    %c0_i32_0 = arith.constant 0 : i32
    return %arg0, %c0_i32 : i32, i32
  }
}

</mosaic_0001>

<bundles_post_ra>
// kernel: tpu_custom_call.1
= control target key start
LH: loop header
LB: loop body
LE: loop exit
PB: predicated region body
PF: predicated region fallthrough
CT: control target
= control target key end

     0   :  { %12 = vsyncpa [#allocation3], 0  ;;  %s683_s0 = inlined_call_operand.hbm [shape: f32[8,32], index: 0, kind: input, shape index: {}]   ;;  %s684_s1 = inlined_call_operand.hbm [shape: f32[32,256], index: 1, kind: input, shape index: {}]   ;;  %s685_s2 = inlined_call_operand.hbm [shape: f32[1,256], index: 2, kind: input, shape index: {}]   ;;  %s686_s3 = inlined_call_operand.hbm [shape: f32[256,256], index: 3, kind: input, shape index: {}]   ;;  %s687_s4 = inlined_call_operand.vmem [shape: f32[1,256], index: 4, kind: input, shape index: {}]   ;;  %s688_s5 = inlined_call_operand.hbm [shape: f32[256,128], index: 5, kind: input, shape index: {}]   ;;  %s689_s6 = inlined_call_operand.vmem [shape: f32[1,128], index: 6, kind: input, shape index: {}]   ;;  %s690_s7 = inlined_call_operand.hbm [shape: f32[8,128], index: 7, kind: output, shape index: {}]  }
   0x1   :  { %13 = vsyncpa [#allocation6], 0 }
   0x2   :  { %14 = vsyncpa [#allocation9], 0  ;;  %s31_s26 = sshll.u32 %s684_s1, 4  ;;  %s32_s26 = int_to_ptr.hbm [resolvable:$true] %s31_s26 }
   0x3   :  { %15 = vsyncpa [#allocation4], 0  ;;  %s609_s27 = smov [#allocation5]   ;;  %s55_s8 = sshll.u32 %s686_s3, 4  ;;  %s56_s8 = int_to_ptr.hbm [resolvable:$true] %s55_s8 }
   0x4   :  { %s33_s28 = sshll.u32 %s609_s27, 4  ;;  %s610_s9 = smov 256   ;;  %s34_s28 = int_to_ptr.vmem [resolvable:$true] %s33_s28 }
   0x5   :  { %s611_s10 = smov 16   ;;  %s612_s11 = smov [#allocation8]  }
   0x6   :  { %39 = dma.hbm_to_vmem [thread:$0]  %s32_s26, 1024, %s34_s28, [#allocation6], %s610_s9, %s610_s9, %s611_s10  }
   0x7   :  { %s57_s12 = sshll.u32 %s612_s11, 4  ;;  %s21_s15 = sshll.u32 %s683_s0, 4  ;;  %s58_s12 = int_to_ptr.vmem [resolvable:$true] %s57_s12  ;;  %s22_s15 = int_to_ptr.hbm [resolvable:$true] %s21_s15 }
   0x8   :  { %63 = dma.hbm_to_vmem [thread:$0]  %s56_s8, 8192, %s58_s12, [#allocation9], %s610_s9, %s610_s9, %s611_s10  }
   0x9   :  { %s45_s17 = sshll.u32 %s685_s2, 4  ;;  %s613_s18 = smov [#allocation2]   ;;  %s46_s17 = int_to_ptr.hbm [resolvable:$true] %s45_s17 }
   0xa   :  { %s23_s19 = sshll.u32 %s613_s18, 4  ;;  %s614_s3 = smov [#allocation7]   ;;  %s24_s19 = int_to_ptr.vmem [resolvable:$true] %s23_s19 }
   0xb   :  { %26 = dma.hbm_to_vmem [thread:$0]  %s22_s15, 128, %s24_s19, [#allocation3]  }
   0xc   :  { %s47_s20 = sshll.u32 %s614_s3, 4  ;;  %s70_s23 = sshll.u32 %s688_s5, 4  ;;  %s48_s20 = int_to_ptr.vmem [resolvable:$true] %s47_s20  ;;  %s71_s23 = int_to_ptr.hbm [resolvable:$true] %s70_s23 }
   0xd   :  { %50 = dma.hbm_to_vmem [thread:$0]  %s46_s17, 32, %s48_s20, [#allocation6]  }
   0xe   :  { %s615_s0 = smov [#allocation10]   ;;  %s616_s25 = smov 128  }
   0xf   :  { %s72_s24 = sshll.u32 %s615_s0, 4  ;;  %s617_s26 = smov 8   ;;  %s73_s24 = int_to_ptr.vmem [resolvable:$true] %s72_s24 }
  0x10   :  { %78 = dma.hbm_to_vmem [thread:$0]  %s71_s23, 4096, %s73_s24, [#allocation9], %s616_s25, %s616_s25, %s617_s26  }
  0x11   :  { %601 = dma.done.wait [#allocation3], 128  }
  0x12   :  { %602 = vsyncadd [#allocation3], 4294967168 }
  0x13   :  { %603 = dma.done.wait [#allocation6], 1056  }
  0x14   :  { %604 = vsyncadd [#allocation6], 4294966240 }
  0x15   :  { %605 = dma.done.wait [#allocation9], 12288  }
  0x16   :  { %606 = vsyncadd [#allocation9], 4294955008  ;;  %v108_v0 = vld [vmem:[#allocation5 + $0x30] sm:$0xff]  ;;  %v106_v1 = vld [vmem:[#allocation5 + $0x20] sm:$0xff]  ;;  %vm116_vm0 = vcmask 261120   ;;  %s420_s8 = sshll.u32 %s690_s7, 4  ;;  %s421_s8 = int_to_ptr.hbm [resolvable:$true] %s420_s8 }
  0x17   :  { %v109_v2 = vld [vmem:[#allocation5 + $0x38] sm:$0xff]  ;;  %132 = vmatpush.msra.mxu0 %v108_v0  ;;  %v107_v3 = vld [vmem:[#allocation5 + $0x28] sm:$0xff]  ;;  %v104_v4 = vld [vmem:[#allocation5 + $0x10] sm:$0xff] }
  0x18   :  { %152 = vmatpush.msra.mxu1 %v109_v2  ;;  %v105_v5 = vld [vmem:[#allocation5 + $0x18] sm:$0xff]  ;;  %v190_v7 = vld [vmem:[#allocation8 + $0xe0] sm:$0xff]  ;;  %v191_v16 = vld [vmem:[#allocation8 + $0xe8] sm:$0xff] }
  0x19   :  { %133 = vmatpush.msra.mxu0 %v106_v1  ;;  %v192_v6 = vld [vmem:[#allocation8 + $0xf0] sm:$0xff]  ;;  %v102_v8 = vld [vmem:[#allocation5] sm:$0xff]  ;;  %v103_v9 = vld [vmem:[#allocation5 + $0x8] sm:$0xff] }
  0x1a   :  { %153 = vmatpush.msra.mxu1 %v107_v3  ;;  %232 = vmatpush.msra.mxu2 %v192_v6  ;;  %v224_v10 = vld [vmem:[#allocation8 + $0x1f0] sm:$0xff]  ;;  %v193_v12 = vld [vmem:[#allocation8 + $0xf8] sm:$0xff]  ;;  %v222_v15 = vld [vmem:[#allocation8 + $0x1e0] sm:$0xff] }
  0x1b   :  { %134 = vmatpush.msra.mxu0 %v104_v4  ;;  %v101_v11 = vld [vmem:[#allocation2] sm:$0xff]  ;;  %252 = vmatpush.msra.mxu3 %v224_v10  ;;  %v223_v17 = vld [vmem:[#allocation8 + $0x1e8] sm:$0xff]  ;;  %v186_v18 = vld [vmem:[#allocation8 + $0xc0] sm:$0xff] }
  0x1c   :  { %154 = vmatpush.msra.mxu1 %v105_v5  ;;  %233 = vmatpush.msra.mxu2 %v190_v7  ;;  %v225_v13 = vld [vmem:[#allocation8 + $0x1f8] sm:$0xff]  ;;  %v188_v14 = vld [vmem:[#allocation8 + $0xd0] sm:$0xff]  ;;  %v218_v23 = vld [vmem:[#allocation8 + $0x1c0] sm:$0xff] }
  0x1d   :  { %135 = vmatpush.msra.mxu0 %v102_v8  ;;  %v220_v19 = vld [vmem:[#allocation8 + $0x1d0] sm:$0xff]  ;;  %253 = vmatpush.msra.mxu3 %v222_v15  ;;  %v189_v20 = vld [vmem:[#allocation8 + $0xd8] sm:$0xff]  ;;  %v187_v24 = vld [vmem:[#allocation8 + $0xc8] sm:$0xff] }
  0x1e   :  { %155 = vmatpush.msra.mxu1 %v103_v9  ;;  %432 = vmatmul.msk.f32.vlgmr.msra.gmra.mxu0 %vm116_vm0, %v101_v11  ;;  %v221_v21 = vld [vmem:[#allocation8 + $0x1d8] sm:$0xff]  ;;  %v184_v22 = vld [vmem:[#allocation8 + $0xb0] sm:$0xff]  ;;  %v219_v25 = vld [vmem:[#allocation8 + $0x1c8] sm:$0xff] }
  0x1f   :  { %433 = vmatmul.msk.f32.vlgmr.msra.gmra.mxu1 %vm116_vm0, %v101_v11  ;;  %272 = vmatpush.msrb.mxu0 %v193_v12  ;;  %v182_v26 = vld [vmem:[#allocation8 + $0xa0] sm:$0xff]  ;;  %v216_v27 = vld [vmem:[#allocation8 + $0x1b0] sm:$0xff]  ;;  %v185_v28 = vld [vmem:[#allocation8 + $0xb8] sm:$0xff] }
  0x20   :  { %292 = vmatpush.msrb.mxu1 %v225_v13  ;;  %234 = vmatpush.msra.mxu2 %v188_v14  ;;  %v217_v29 = vld [vmem:[#allocation8 + $0x1b8] sm:$0xff]  ;;  %v180_v30 = vld [vmem:[#allocation8 + $0x90] sm:$0xff]  ;;  %v214_v31 = vld [vmem:[#allocation8 + $0x1a0] sm:$0xff] }
  0x21   :  { %273 = vmatpush.msrb.mxu0 %v191_v16  ;;  %254 = vmatpush.msra.mxu3 %v220_v19  ;;  %v183_v32 = vld [vmem:[#allocation8 + $0xa8] sm:$0xff]  ;;  %v178_v34 = vld [vmem:[#allocation8 + $0x80] sm:$0xff]  ;;  %v212_v35 = vld [vmem:[#allocation8 + $0x190] sm:$0xff] }
  0x22   :  { %293 = vmatpush.msrb.mxu1 %v223_v17  ;;  %235 = vmatpush.msra.mxu2 %v186_v18  ;;  %v215_v33 = vld [vmem:[#allocation8 + $0x1a8] sm:$0xff]  ;;  %v181_v36 = vld [vmem:[#allocation8 + $0x98] sm:$0xff]  ;;  %v176_v38 = vld [vmem:[#allocation8 + $0x70] sm:$0xff] }
  0x23   :  { %274 = vmatpush.msrb.mxu0 %v189_v20  ;;  %255 = vmatpush.msra.mxu3 %v218_v23  ;;  %v213_v37 = vld [vmem:[#allocation8 + $0x198] sm:$0xff]  ;;  %v210_v39 = vld [vmem:[#allocation8 + $0x180] sm:$0xff]  ;;  %v179_v40 = vld [vmem:[#allocation8 + $0x88] sm:$0xff] }
  0x24   :  { %294 = vmatpush.msrb.mxu1 %v221_v21  ;;  %236 = vmatpush.msra.mxu2 %v184_v22  ;;  %v211_v41 = vld [vmem:[#allocation8 + $0x188] sm:$0xff]  ;;  %v174_v42 = vld [vmem:[#allocation8 + $0x60] sm:$0xff]  ;;  %v208_v43 = vld [vmem:[#allocation8 + $0x170] sm:$0xff] }
  0x25   :  { %275 = vmatpush.msrb.mxu0 %v187_v24  ;;  %256 = vmatpush.msra.mxu3 %v216_v27  ;;  %v177_v44 = vld [vmem:[#allocation8 + $0x78] sm:$0xff]  ;;  %v172_v46 = vld [vmem:[#allocation8 + $0x50] sm:$0xff]  ;;  %v206_v47 = vld [vmem:[#allocation8 + $0x160] sm:$0xff] }
  0x26   :  { %295 = vmatpush.msrb.mxu1 %v219_v25  ;;  %237 = vmatpush.msra.mxu2 %v182_v26  ;;  %v209_v45 = vld [vmem:[#allocation8 + $0x178] sm:$0xff]  ;;  %v175_v48 = vld [vmem:[#allocation8 + $0x68] sm:$0xff]  ;;  %v170_v51 = vld [vmem:[#allocation8 + $0x40] sm:$0xff] }
  0x27   :  { %276 = vmatpush.msrb.mxu0 %v185_v28  ;;  %257 = vmatpush.msra.mxu3 %v214_v31  ;;  %v207_v49 = vld [vmem:[#allocation8 + $0x168] sm:$0xff]  ;;  %v173_v50 = vld [vmem:[#allocation8 + $0x58] sm:$0xff]  ;;  %v204_v52 = vld [vmem:[#allocation8 + $0x150] sm:$0xff] }
  0x28   :  { %296 = vmatpush.msrb.mxu1 %v217_v29  ;;  %238 = vmatpush.msra.mxu2 %v180_v30  ;;  %v171_v53 = vld [vmem:[#allocation8 + $0x48] sm:$0xff]  ;;  %v205_v54 = vld [vmem:[#allocation8 + $0x158] sm:$0xff]  ;;  %v168_v55 = vld [vmem:[#allocation8 + $0x30] sm:$0xff] }
  0x29   :  { %277 = vmatpush.msrb.mxu0 %v183_v32  ;;  %258 = vmatpush.msra.mxu3 %v212_v35  ;;  %v202_v56 = vld [vmem:[#allocation8 + $0x140] sm:$0xff]  ;;  %v169_v57 = vld [vmem:[#allocation8 + $0x38] sm:$0xff]  ;;  %v203_v58 = vld [vmem:[#allocation8 + $0x148] sm:$0xff] }
  0x2a   :  { %297 = vmatpush.msrb.mxu1 %v215_v33  ;;  %239 = vmatpush.msra.mxu2 %v178_v34  ;;  %v166_v59 = vld [vmem:[#allocation8 + $0x20] sm:$0xff]  ;;  %v200_v60 = vld [vmem:[#allocation8 + $0x130] sm:$0xff]  ;;  %v167_v61 = vld [vmem:[#allocation8 + $0x28] sm:$0xff] }
  0x2b   :  { %278 = vmatpush.msrb.mxu0 %v181_v36  ;;  %259 = vmatpush.msra.mxu3 %v210_v39  ;;  %v201_v62 = vld [vmem:[#allocation8 + $0x138] sm:$0xff]  ;;  %v164_v63 = vld [vmem:[#allocation8 + $0x10] sm:$0xff]  ;;  %v198_v0 = vld [vmem:[#allocation8 + $0x120] sm:$0xff] }
  0x2c   :  { %298 = vmatpush.msrb.mxu1 %v213_v37  ;;  %240 = vmatpush.msra.mxu2 %v176_v38  ;;  %v165_v1 = vld [vmem:[#allocation8 + $0x18] sm:$0xff]  ;;  %v199_v2 = vld [vmem:[#allocation8 + $0x128] sm:$0xff]  ;;  %v162_v3 = vld [vmem:[#allocation8] sm:$0xff] }
  0x2d   :  { %279 = vmatpush.msrb.mxu0 %v179_v40  ;;  %260 = vmatpush.msra.mxu3 %v208_v43  ;;  %v196_v4 = vld [vmem:[#allocation8 + $0x110] sm:$0xff]  ;;  %v163_v5 = vld [vmem:[#allocation8 + $0x8] sm:$0xff]  ;;  %v197_v6 = vld [vmem:[#allocation8 + $0x118] sm:$0xff] }
  0x2e   :  { %299 = vmatpush.msrb.mxu1 %v211_v41  ;;  %241 = vmatpush.msra.mxu2 %v174_v42  ;;  %v194_v7 = vld [vmem:[#allocation8 + $0x100] sm:$0xff]  ;;  %v195_v8 = vld [vmem:[#allocation8 + $0x108] sm:$0xff]  ;;  %v345_v9 = vld [vmem:[#allocation10 + $0xf8] sm:$0xff] }
  0x2f   :  { %280 = vmatpush.msrb.mxu0 %v177_v44  ;;  %261 = vmatpush.msra.mxu3 %v206_v47  ;;  %v344_v10 = vld [vmem:[#allocation10 + $0xf0] sm:$0xff]  ;;  %v329_v11 = vld [vmem:[#allocation10 + $0x78] sm:$0xff]  ;;  %v343_v13 = vld [vmem:[#allocation10 + $0xe8] sm:$0xff] }
  0x30   :  { %300 = vmatpush.msrb.mxu1 %v209_v45  ;;  %242 = vmatpush.msra.mxu2 %v172_v46  ;;  %v328_v12 = vld [vmem:[#allocation10 + $0x70] sm:$0xff]  ;;  %v327_v14 = vld [vmem:[#allocation10 + $0x68] sm:$0xff]  ;;  %v342_v15 = vld [vmem:[#allocation10 + $0xe0] sm:$0xff] }
  0x31   :  { %281 = vmatpush.msrb.mxu0 %v175_v48  ;;  %262 = vmatpush.msra.mxu3 %v204_v52  ;;  %v326_v16 = vld [vmem:[#allocation10 + $0x60] sm:$0xff]  ;;  %v341_v17 = vld [vmem:[#allocation10 + $0xd8] sm:$0xff]  ;;  %v340_v19 = vld [vmem:[#allocation10 + $0xd0] sm:$0xff] }
  0x32   :  { %301 = vmatpush.msrb.mxu1 %v207_v49  ;;  %243 = vmatpush.msra.mxu2 %v170_v51  ;;  %v325_v18 = vld [vmem:[#allocation10 + $0x58] sm:$0xff]  ;;  %v324_v20 = vld [vmem:[#allocation10 + $0x50] sm:$0xff]  ;;  %v339_v21 = vld [vmem:[#allocation10 + $0xc8] sm:$0xff] }
  0x33   :  { %282 = vmatpush.msrb.mxu0 %v173_v50  ;;  %263 = vmatpush.msra.mxu3 %v202_v56  ;;  %v323_v22 = vld [vmem:[#allocation10 + $0x48] sm:$0xff]  ;;  %v338_v23 = vld [vmem:[#allocation10 + $0xc0] sm:$0xff]  ;;  %v337_v24 = vld [vmem:[#allocation10 + $0xb8] sm:$0xff] }
  0x34   :  { %302 = vmatpush.msrb.mxu1 %v205_v54  ;;  %244 = vmatpush.msra.mxu2 %v168_v55  ;;  %v110_v25 = vld [vmem:[#allocation7] sm:$0x3]  ;;  %v336_v26 = vld [vmem:[#allocation10 + $0xb0] sm:$0xff]  ;;  %v322_v35 = vld [vmem:[#allocation10 + $0x40] sm:$0xff] }
  0x35   :  { %283 = vmatpush.msrb.mxu0 %v171_v53  ;;  %264 = vmatpush.msra.mxu3 %v200_v60  ;;  %v112_v27 = vperm.slane %v110_v25, 0  ;;  %v113_v28 = vperm.slane %v110_v25, 1  ;;  %v335_v36 = vld [vmem:[#allocation10 + $0xa8] sm:$0xff]  ;;  %v321_v37 = vld [vmem:[#allocation10 + $0x38] sm:$0xff]  ;;  %v334_v38 = vld [vmem:[#allocation10 + $0xa0] sm:$0xff] }
  0x36   :  { %303 = vmatpush.msrb.mxu1 %v203_v58  ;;  %245 = vmatpush.msra.mxu2 %v166_v59  ;;  %v320_v39 = vld [vmem:[#allocation10 + $0x30] sm:$0xff]  ;;  %v333_v40 = vld [vmem:[#allocation10 + $0x98] sm:$0xff]  ;;  %v319_v41 = vld [vmem:[#allocation10 + $0x28] sm:$0xff] }
  0x37   :  { %284 = vmatpush.msrb.mxu0 %v169_v57  ;;  %265 = vmatpush.msra.mxu3 %v198_v0  ;;  %v332_v42 = vld [vmem:[#allocation10 + $0x90] sm:$0xff]  ;;  %v318_v43 = vld [vmem:[#allocation10 + $0x20] sm:$0xff]  ;;  %v331_v44 = vld [vmem:[#allocation10 + $0x88] sm:$0xff] }
  0x38   :  { %304 = vmatpush.msrb.mxu1 %v201_v62  ;;  %246 = vmatpush.msra.mxu2 %v164_v63  ;;  %v317_v45 = vld [vmem:[#allocation10 + $0x18] sm:$0xff]  ;;  %v330_v46 = vld [vmem:[#allocation10 + $0x80] sm:$0xff]  ;;  %v316_v47 = vld [vmem:[#allocation10 + $0x10] sm:$0xff] }
  0x39   :  { %285 = vmatpush.msrb.mxu0 %v167_v61  ;;  %266 = vmatpush.msra.mxu3 %v196_v4  ;;  %v315_v48 = vld [vmem:[#allocation10 + $0x8] sm:$0xff]  ;;  %v314_v49 = vld [vmem:[#allocation10] sm:$0xff]  ;;  %v226_v50 = vld [vmem:[%s687_s4] sm:$0x3]  ;;  %s618_s4 = smov [#allocation11]  }
  0x3a   :  { %305 = vmatpush.msrb.mxu1 %v199_v2  ;;  %247 = vmatpush.msra.mxu2 %v162_v3  ;;  %v229_v51 = vperm.slane %v226_v50, 1  ;;  %v228_v56 = vperm.slane %v226_v50, 0  ;;  %v444_v63 = vld [vmem:[%s689_s6] ss:$0 sm:$0xff]  ;;  %s418_s6 = sshll.u32 %s618_s4, 4  ;;  %s419_s6 = int_to_ptr.vmem [resolvable:$true] %s418_s6 }
  0x3b   :  { %286 = vmatpush.msrb.mxu0 %v165_v1  ;;  %267 = vmatpush.msra.mxu3 %v194_v7 }
  0x3c   :  { %306 = vmatpush.msrb.mxu1 %v197_v6  ;;  %350 = vmatpush.msrb.mxu2 %v329_v11 }
  0x3d   :  { %287 = vmatpush.msrb.mxu0 %v163_v5  ;;  %370 = vmatpush.msrb.mxu3 %v345_v9 }
  0x3e   :  { %307 = vmatpush.msrb.mxu1 %v195_v8  ;;  %351 = vmatpush.msrb.mxu2 %v328_v12 }
  0x3f   :  { %371 = vmatpush.msrb.mxu3 %v344_v10 }
  0x40   :  { %352 = vmatpush.msrb.mxu2 %v327_v14 }
  0x41   :  { %372 = vmatpush.msrb.mxu3 %v343_v13 }
  0x42   :  { %353 = vmatpush.msrb.mxu2 %v326_v16 }
  0x43   :  { %373 = vmatpush.msrb.mxu3 %v342_v15 }
  0x44   :  { %354 = vmatpush.msrb.mxu2 %v325_v18 }
  0x45   :  { %374 = vmatpush.msrb.mxu3 %v341_v17 }
  0x46   :  { %355 = vmatpush.msrb.mxu2 %v324_v20 }
  0x47   :  { %375 = vmatpush.msrb.mxu3 %v340_v19 }
  0x48   :  { %356 = vmatpush.msrb.mxu2 %v323_v22 }
  0x49   :  { %376 = vmatpush.msrb.mxu3 %v339_v21 }
  0x4a   :  { %357 = vmatpush.msrb.mxu2 %v322_v35 }
  0x4b   :  { %377 = vmatpush.msrb.mxu3 %v338_v23 }
  0x4c   :  { %358 = vmatpush.msrb.mxu2 %v321_v37 }
  0x4d   :  { %378 = vmatpush.msrb.mxu3 %v337_v24 }
  0x4e   :  { %359 = vmatpush.msrb.mxu2 %v320_v39 }
  0x4f   :  { %379 = vmatpush.msrb.mxu3 %v336_v26 }
  0x50   :  { %360 = vmatpush.msrb.mxu2 %v319_v41 }
  0x51   :  { %380 = vmatpush.msrb.mxu3 %v335_v36 }
  0x52   :  { %361 = vmatpush.msrb.mxu2 %v318_v43 }
  0x53   :  { %381 = vmatpush.msrb.mxu3 %v334_v38 }
  0x54   :  { %362 = vmatpush.msrb.mxu2 %v317_v45 }
  0x55   :  { %382 = vmatpush.msrb.mxu3 %v333_v40 }
  0x56   :  { %363 = vmatpush.msrb.mxu2 %v316_v47 }
  0x57   :  { %383 = vmatpush.msrb.mxu3 %v332_v42 }
  0x58   :  { %364 = vmatpush.msrb.mxu2 %v315_v48 }
  0x59   :  { %384 = vmatpush.msrb.mxu3 %v331_v44 }
  0x5a   :  { %365 = vmatpush.msrb.mxu2 %v314_v49 }
  0x5b   :  { %385 = vmatpush.msrb.mxu3 %v330_v46 }
  0x9b   :  { %v137_v29 = vpop.f32.mrf.mxu0 }
  0x9c   :  { %v157_v30 = vpop.f32.mrf.mxu1  ;;  %v138_v31 = vadd.f32 %v137_v29, %v112_v27 }
  0x9d   :  { %v158_v32 = vadd.f32 %v157_v30, %v113_v28 }
  0x9e   :  { %445 = vtanh.f32 %v138_v31 }
  0x9f   :  { %447 = vtanh.f32 %v158_v32 }
  0xa4   :  { %v446_v33 = vpop.eup %445 }
  0xa5   :  { %v448_v34 = vpop.eup %447  ;;  %248 = vmatmul.f32.vlgmr.msra.gmra.mxu2 %v446_v33  ;;  %288 = vmatmul.f32.vlgmr.msrb.gmra.mxu0 %v446_v33 }
  0xa6   :  { %268 = vmatmul.f32.vlgmr.msra.gmra.mxu3 %v448_v34  ;;  %308 = vmatmul.f32.vlgmr.msrb.gmra.mxu1 %v448_v34 }
 0x122   :  { %v289_v52 = vpop.f32.mrf.mxu0 }
 0x123   :  { %v290_v53 = vadd.f32 %v289_v52, %v229_v51  ;;  %v309_v54 = vpop.f32.mrf.mxu1 }
 0x125   :  { %v310_v55 = vadd.f32 %v309_v54, %v290_v53 }
 0x127   :  { %449 = vtanh.f32 %v310_v55 }
 0x128   :  { %v249_v57 = vpop.f32.mrf.mxu2 }
 0x129   :  { %v250_v58 = vadd.f32 %v249_v57, %v228_v56  ;;  %v269_v59 = vpop.f32.mrf.mxu3 }
 0x12b   :  { %v270_v60 = vadd.f32 %v269_v59, %v250_v58 }
 0x12d   :  { %v450_v61 = vpop.eup %449  ;;  %451 = vtanh.f32 %v270_v60 }
 0x12e   :  { %386 = vmatmul.f32.vlgmr.msrb.gmra.mxu3 %v450_v61 }
 0x133   :  { %v452_v62 = vpop.eup %451 }
 0x134   :  { %366 = vmatmul.f32.vlgmr.msrb.gmra.mxu2 %v452_v62 }
 0x1b1   :  { %v387_v2 = vpop.f32.mrf.mxu3 }
 0x1b7   :  { %v367_v0 = vpop.f32.mrf.mxu2 }
 0x1b8   :  { %v368_v1 = vadd.f32 %v444_v63, %v367_v0 }
 0x1ba   :  { %v388_v3 = vadd.f32 %v387_v2, %v368_v1 }
 0x1bc   :  { %390 = vmax.xlane.f32.xlu0 %v388_v3 }
 0x22f   :  { %v391_v4 = vpop.xlane.xlu0 %390 }
 0x230   :  { %v392_v5 = vsub.f32 %v388_v3, %v391_v4 }
 0x232   :  { %v393_v6 = vmul.f32 1.442695, %v392_v5 }
 0x234   :  { %453 = vpow2.f32 %v393_v6 }
 0x23a   :  { %v454_v7 = vpop.eup %453 }
 0x23b   :  { %395 = vadd.xlane.f32.xlu0 %v454_v7 }
 0x2ae   :  { %v396_v8 = vpop.xlane.xlu0 %395 }
 0x2af   :  { %455 = vrcp.f32 %v396_v8  ;;  %v408_v12 = vand.u32 2147483648, %v396_v8  ;;  %v406_v14 = vand.u32 2147483647, %v396_v8  ;;  %vm402_vm2 = vweird.f32 %v396_v8 }
 0x2b1   :  { %v409_v16 = vor.u32 1.1754944e-38, %v408_v12  ;;  %vm407_vm4 = vcmp.eq.f32.partialorder %v406_v14, 8.507059e+37 }
 0x2b5   :  { %v456_v9 = vpop.eup %455 }
 0x2b6   :  { %v398_v10 = vmul.f32 %v456_v9, %v396_v8  ;;  %vm403_vm1 = vweird.f32 %v456_v9 }
 0x2b7   :  { %vm404_vm3 = vmor %vm402_vm2, %vm403_vm1 }
 0x2b8   :  { %v399_v11 = vsub.f32 1.0, %v398_v10 }
 0x2ba   :  { %v400_v13 = vmul.f32 %v456_v9, %v399_v11 }
 0x2bc   :  { %v401_v15 = vadd.f32 %v456_v9, %v400_v13 }
 0x2be   :  { %v405_v17 = vsel %vm404_vm3, %v456_v9, %v401_v15 }
 0x2bf   :  { %v410_v18 = vsel %vm407_vm4, %v409_v16, %v405_v17 }
 0x2c0   :  { %v411_v19 = vmul.f32 %v454_v7, %v410_v18 }
 0x2c2   :  { %412 = vst [vmem:[#allocation11] sm:$0xff] %v411_v19 }
 0x2c3   :  { %423 = dma.vmem_to_hbm [thread:$0]  %s419_s6, 128, %s421_s8, [#allocation4]  }
 0x2c4   :  { %607 = dma.done.wait [#allocation4], 128  }
 0x2c5   :  { %608 = vsyncadd [#allocation4], 4294967168 }
 0x2c6   :  { %428 = vsyncpa [#allocation3], 1 }
 0x2c7   :  { %429 = vsyncpa [#allocation6], 1 }
 0x2c8   :  { %430 = vsyncpa [#allocation9], 1 }
 0x2c9   :  { %431 = vsyncpa [#allocation4], 1 }

</bundles_post_ra>
